<compile_context>
chip_gen: v6e
topology: v6e:2x2x1
jax: 0.10.0
libtpu: 0.0.40
codegen_flags: <defaults>
</compile_context>

<pallas_src>
import jax
import jax.numpy as jnp
from jax.experimental import pallas as pl
from jax.experimental.pallas import tpu as pltpu

BN_EPS = 1e-5
LEAKY_SLOPE = 0.2


def _make_conv_stats_kernel(tap_offsets, l_wide):
    """Pass 1: direct conv via in-kernel tap accumulation + per-image BN partials.

    Refs (per grid step = one image):
      x_ref    : (1, Cin, L_in)    bf16  flattened padded image (+ zero tail row)
      w_ref    : (T, Cout, Cin)    bf16  one (Cout, Cin) MXU operand per conv tap
      mask_ref : (1, L_wide)       f32   1.0 on valid output columns, 0.0 on wrap cols
      y_ref    : (1, Cout, L_wide) bf16  masked "wide" conv output (row pitch Wp)
      psum_ref : (1, Cout, 1)      f32   per-image sum over valid positions
      psq_ref  : (1, Cout, 1)      f32   per-image sum of squares
    """

    def kernel(x_ref, w_ref, mask_ref, y_ref, psum_ref, psq_ref):
        # kh*kw static-offset tap matmuls on the MXU, accumulated in f32.
        off0 = tap_offsets[0]
        acc = jnp.dot(w_ref[0], x_ref[0, :, off0:off0 + l_wide],
                      preferred_element_type=jnp.float32)
        for t in range(1, len(tap_offsets)):
            off = tap_offsets[t]
            acc = acc + jnp.dot(w_ref[t], x_ref[0, :, off:off + l_wide],
                                preferred_element_type=jnp.float32)

        # Zero the wrap-around columns so they contribute nothing to the BN stats
        # (and never reach the final output).
        acc = acc * mask_ref[...]
        y_ref[0] = acc.astype(y_ref.dtype)

        # One-pass stats (lane-axis reduce -> XLU).
        # TODO(synk): E[y^2]-E[y]^2 in f32 can cancel for large means; use a centered /
        # Welford-style update for real activation scales.
        psum_ref[0] = jnp.sum(acc, axis=1, keepdims=True)
        psq_ref[0] = jnp.sum(acc * acc, axis=1, keepdims=True)

    return kernel


def _make_bn_lrelu_kernel(ho, wo, wp):
    """Pass 2: folded BN affine + LeakyReLU, writing the NCHW output directly."""

    def kernel(y_ref, scale_ref, shift_ref, o_ref):
        # Elementwise math in f32 on the lane-dense wide block.
        z = y_ref[0].astype(jnp.float32) * scale_ref[...] + shift_ref[...]
        z = jnp.where(z >= 0, z, LEAKY_SLOPE * z)
        # Narrow each wide row (pitch wp) to its wo valid columns and store it at its
        # final NCHW position -> no post-kernel XLA transpose/reshape of the output.
        # (For realistic W >= 128 these per-row stores are lane-dense.)
        for r in range(ho):
            o_ref[0, :, r, :] = z[:, r * wp:r * wp + wo]

    return kernel


def conv_layer2_forward(x, weight, bias, gamma, beta, stride, padding):
    """x: (N, Cin, H, W) NCHW f32; weight: (Cout, Cin, kh, kw) OIHW (PyTorch layout)."""
    N, Cin, H, W = x.shape
    Cout, _, kh, kw = weight.shape
    del bias  # Exactly cancelled by training-mode BatchNorm's batch-mean subtraction.

    if stride != 1:
        # Lower a strided conv to an equivalent 1x1 / stride-1 conv on a tap-gathered
        # bf16 input so the same direct-conv kernel handles it.
        # TODO(synk): support stride > 1 with strided tap slices inside the kernel to
        # avoid this kh*kw-fold host-side gather.
        Ho = (H + 2 * padding - kh) // stride + 1
        Wo = (W + 2 * padding - kw) // stride + 1
        xp = jnp.pad(x.astype(jnp.bfloat16),
                     ((0, 0), (0, 0), (padding, padding), (padding, padding)))
        taps = [xp[:, :, dy:dy + stride * Ho:stride, dx:dx + stride * Wo:stride]
                for dy in range(kh) for dx in range(kw)]
        x = jnp.concatenate(taps, axis=1)                                   # (N, K, Ho, Wo)
        weight = weight.transpose(0, 2, 3, 1).reshape(Cout, Cin * kh * kw, 1, 1)
        N, Cin, H, W = x.shape
        kh = kw = 1
        stride = 1
        padding = 0

    Hp, Wp = H + 2 * padding, W + 2 * padding
    Ho, Wo = Hp - kh + 1, Wp - kw + 1
    n_taps = kh * kw
    l_wide = Ho * Wp            # "wide" output: row pitch Wp, first Wo columns valid
    l_in = (Hp + 1) * Wp        # one extra zero row = tail the last taps may read into

    # Padded, bf16, spatially flattened input: one HBM copy of x, no im2col.
    x_flat = jnp.pad(x.astype(jnp.bfloat16),
                     ((0, 0), (0, 0), (padding, padding + 1), (padding, padding))
                     ).reshape(N, Cin, l_in)
    # (kh*kw, Cout, Cin): one MXU operand per tap, order matches tap_offsets.
    w_taps = weight.transpose(2, 3, 0, 1).reshape(n_taps, Cout, Cin).astype(jnp.bfloat16)
    tap_offsets = [dy * Wp + dx for dy in range(kh) for dx in range(kw)]
    valid_mask = (jnp.arange(l_wide, dtype=jnp.int32) % Wp < Wo
                  ).astype(jnp.float32).reshape(1, l_wide)

    cparams = pltpu.CompilerParams(
        dimension_semantics=("parallel",),   # one image per step; shards v7x's 2 TCs
        vmem_limit_bytes=32 << 20,
    )
    # TODO(synk): for large Cin*Hp*Wp images add a within-image row-block grid axis
    # (halo rows via manual DMA) sized from pltpu.get_tpu_info().vmem_capacity_bytes.

    # ---- Pass 1: direct conv (lane-dense wide tiles) + per-image BN partials ----
    y_wide, psum, psq = pl.pallas_call(
        _make_conv_stats_kernel(tap_offsets, l_wide),
        out_shape=(
            jax.ShapeDtypeStruct((N, Cout, l_wide), jnp.bfloat16),
            jax.ShapeDtypeStruct((N, Cout, 1), jnp.float32),
            jax.ShapeDtypeStruct((N, Cout, 1), jnp.float32),
        ),
        grid_spec=pltpu.PrefetchScalarGridSpec(
            num_scalar_prefetch=0,
            grid=(N,),
            in_specs=[
                pl.BlockSpec((1, Cin, l_in), lambda n: (n, 0, 0)),
                pl.BlockSpec((n_taps, Cout, Cin), lambda n: (0, 0, 0)),
                pl.BlockSpec((1, l_wide), lambda n: (0, 0)),
            ],
            out_specs=[
                pl.BlockSpec((1, Cout, l_wide), lambda n: (n, 0, 0)),
                pl.BlockSpec((1, Cout, 1), lambda n: (n, 0, 0)),
                pl.BlockSpec((1, Cout, 1), lambda n: (n, 0, 0)),
            ],
        ),
        compiler_params=cparams,
    )(x_flat, w_taps, valid_mask)

    # ---- Tiny host-side finalize (2*N*Cout floats): fold BN into scale/shift ----
    count = float(N * Ho * Wo)                         # true element count (mask already
    mean = jnp.sum(psum, axis=0) / count               #  zeroed the wide wrap columns)
    var = jnp.sum(psq, axis=0) / count - mean * mean   # biased var = PyTorch training BN
    inv_std = jax.lax.rsqrt(var + BN_EPS)
    scale = gamma.reshape(Cout, 1).astype(jnp.float32) * inv_std
    shift = beta.reshape(Cout, 1).astype(jnp.float32) - mean * scale

    # ---- Pass 2: y*scale + shift, LeakyReLU, direct NCHW store ----
    out = pl.pallas_call(
        _make_bn_lrelu_kernel(Ho, Wo, Wp),
        out_shape=jax.ShapeDtypeStruct((N, Cout, Ho, Wo), jnp.float32),
        grid_spec=pltpu.PrefetchScalarGridSpec(
            num_scalar_prefetch=0,
            grid=(N,),
            in_specs=[
                pl.BlockSpec((1, Cout, l_wide), lambda n: (n, 0, 0)),
                pl.BlockSpec((Cout, 1), lambda n: (0, 0)),
                pl.BlockSpec((Cout, 1), lambda n: (0, 0)),
            ],
            out_specs=pl.BlockSpec((1, Cout, Ho, Wo), lambda n: (n, 0, 0, 0)),
        ),
        compiler_params=cparams,
    )(y_wide, scale, shift)
    return out


def _reference(x, weight, bias, gamma, beta, stride, padding):
    y = jax.lax.conv_general_dilated(
        x.astype(jnp.float32), weight.astype(jnp.float32),
        window_strides=(stride, stride),
        padding=[(padding, padding), (padding, padding)],
        dimension_numbers=("NCHW", "OIHW", "NCHW"),
    ) + bias.reshape(1, -1, 1, 1)
    mean = jnp.mean(y, axis=(0, 2, 3), keepdims=True)
    var = jnp.mean((y - mean) ** 2, axis=(0, 2, 3), keepdims=True)
    y = (y - mean) * jax.lax.rsqrt(var + BN_EPS)
    y = gamma.reshape(1, -1, 1, 1) * y + beta.reshape(1, -1, 1, 1)
    return jnp.where(y >= 0, y, LEAKY_SLOPE * y)


if __name__ == "__main__":
    # ConvLayer2(channel_input=4, channel_output=8, kernal=3, stride=1, padding=1)
    N, Cin, H, W = 2, 4, 16, 16
    Cout, kh, kw = 8, 3, 3

    key = jax.random.PRNGKey(0)
    kx, kw_, kb, kg, kbt = jax.random.split(key, 5)
    x = jax.random.normal(kx, (N, Cin, H, W), dtype=jnp.float32)
    weight = 0.1 * jax.random.normal(kw_, (Cout, Cin, kh, kw), dtype=jnp.float32)
    bias = 0.1 * jax.random.normal(kb, (Cout,), dtype=jnp.float32)
    gamma = 1.0 + 0.1 * jax.random.normal(kg, (Cout,), dtype=jnp.float32)
    beta = 0.1 * jax.random.normal(kbt, (Cout,), dtype=jnp.float32)

    # Stride-1 direct-conv fast path (the spec'd configuration).
    out = conv_layer2_forward(x, weight, bias, gamma, beta, stride=1, padding=1)
    out = jax.block_until_ready(out)
    ref = _reference(x, weight, bias, gamma, beta, 1, 1)
    assert out.shape == (N, Cout, H, W)
    # bf16 MXU inputs / bf16 intermediate (f32 accumulation) -> bf16-level tolerance.
    assert jnp.allclose(out, ref, rtol=5e-2, atol=5e-2), "stride-1 mismatch vs reference"

    # Strided configuration exercises the stride>1 lowering path of the same kernels.
    out2 = conv_layer2_forward(x, weight, bias, gamma, beta, stride=2, padding=1)
    out2 = jax.block_until_ready(out2)
    ref2 = _reference(x, weight, bias, gamma, beta, 2, 1)
    assert out2.shape == (N, Cout, 8, 8)
    assert jnp.allclose(out2, ref2, rtol=5e-2, atol=5e-2), "stride-2 mismatch vs reference"

    print("KERNEL_OK")
</pallas_src>

<mosaic_0001>
module attributes {stable_mosaic.version = 11 : i64} {
  func.func @kernel(%arg0: i32, %arg1: memref<1x4x342xbf16, #tpu.memory_space<vmem>>, %arg2: memref<9x8x4xbf16, #tpu.memory_space<vmem>>, %arg3: memref<1x288xf32, #tpu.memory_space<vmem>>, %arg4: memref<1x8x288xbf16, #tpu.memory_space<vmem>>, %arg5: memref<1x8x1xf32, #tpu.memory_space<vmem>>, %arg6: memref<1x8x1xf32, #tpu.memory_space<vmem>>) attributes {dimension_semantics = [#tpu.dimension_semantics<parallel>], iteration_bounds = array<i64: 2>, scalar_prefetch = 0 : i64, scratch_operands = 0 : i64, tpu.core_type = #tpu.core_type<tc>, window_params = [{transform_indices = @transform_0, window_bounds = array<i64: 1, 4, 342>}, {pipeline_mode = #tpu.pipeline_mode<synchronous>, transform_indices = @transform_1, window_bounds = array<i64: 9, 8, 4>}, {pipeline_mode = #tpu.pipeline_mode<synchronous>, transform_indices = @transform_2, window_bounds = array<i64: 1, 288>}, {transform_indices = @transform_3, window_bounds = array<i64: 1, 8, 288>}, {transform_indices = @transform_4, window_bounds = array<i64: 1, 8, 1>}, {transform_indices = @transform_5, window_bounds = array<i64: 1, 8, 1>}]} {
    %c0 = arith.constant 0 : index
    %c0_0 = arith.constant 0 : index
    %c0_1 = arith.constant 0 : index
    %0 = vector.load %arg2[%c0, %c0_0, %c0_1] : memref<9x8x4xbf16, #tpu.memory_space<vmem>>, vector<1x8x4xbf16>
    %1 = vector.shape_cast %0 : vector<1x8x4xbf16> to vector<8x4xbf16>
    %c0_2 = arith.constant 0 : index
    %c0_3 = arith.constant 0 : index
    %c0_4 = arith.constant 0 : index
    %2 = vector.load %arg1[%c0_2, %c0_3, %c0_4] : memref<1x4x342xbf16, #tpu.memory_space<vmem>>, vector<1x4x288xbf16>
    %3 = vector.shape_cast %2 : vector<1x4x288xbf16> to vector<4x288xbf16>
    %cst = arith.constant dense<0.000000e+00> : vector<8x288xf32>
    %4 = tpu.matmul %1, %3, %cst {dimension_numbers = #tpu.dot_dimension_numbers<[1], [0], [0], [1], [0, 0, 1, 1], [], []>} : vector<8x4xbf16>, vector<4x288xbf16>, vector<8x288xf32> -> vector<8x288xf32>
    %c1 = arith.constant 1 : index
    %c0_5 = arith.constant 0 : index
    %c0_6 = arith.constant 0 : index
    %5 = vector.load %arg2[%c1, %c0_5, %c0_6] : memref<9x8x4xbf16, #tpu.memory_space<vmem>>, vector<1x8x4xbf16>
    %6 = vector.shape_cast %5 : vector<1x8x4xbf16> to vector<8x4xbf16>
    %c0_7 = arith.constant 0 : index
    %c0_8 = arith.constant 0 : index
    %c1_9 = arith.constant 1 : index
    %7 = vector.load %arg1[%c0_7, %c0_8, %c1_9] : memref<1x4x342xbf16, #tpu.memory_space<vmem>>, vector<1x4x288xbf16>
    %8 = vector.shape_cast %7 : vector<1x4x288xbf16> to vector<4x288xbf16>
    %cst_10 = arith.constant dense<0.000000e+00> : vector<8x288xf32>
    %9 = tpu.matmul %6, %8, %cst_10 {dimension_numbers = #tpu.dot_dimension_numbers<[1], [0], [0], [1], [0, 0, 1, 1], [], []>} : vector<8x4xbf16>, vector<4x288xbf16>, vector<8x288xf32> -> vector<8x288xf32>
    %10 = arith.addf %4, %9 : vector<8x288xf32>
    %c2 = arith.constant 2 : index
    %c0_11 = arith.constant 0 : index
    %c0_12 = arith.constant 0 : index
    %11 = vector.load %arg2[%c2, %c0_11, %c0_12] : memref<9x8x4xbf16, #tpu.memory_space<vmem>>, vector<1x8x4xbf16>
    %12 = vector.shape_cast %11 : vector<1x8x4xbf16> to vector<8x4xbf16>
    %c0_13 = arith.constant 0 : index
    %c0_14 = arith.constant 0 : index
    %c2_15 = arith.constant 2 : index
    %13 = vector.load %arg1[%c0_13, %c0_14, %c2_15] : memref<1x4x342xbf16, #tpu.memory_space<vmem>>, vector<1x4x288xbf16>
    %14 = vector.shape_cast %13 : vector<1x4x288xbf16> to vector<4x288xbf16>
    %cst_16 = arith.constant dense<0.000000e+00> : vector<8x288xf32>
    %15 = tpu.matmul %12, %14, %cst_16 {dimension_numbers = #tpu.dot_dimension_numbers<[1], [0], [0], [1], [0, 0, 1, 1], [], []>} : vector<8x4xbf16>, vector<4x288xbf16>, vector<8x288xf32> -> vector<8x288xf32>
    %16 = arith.addf %10, %15 : vector<8x288xf32>
    %c3 = arith.constant 3 : index
    %c0_17 = arith.constant 0 : index
    %c0_18 = arith.constant 0 : index
    %17 = vector.load %arg2[%c3, %c0_17, %c0_18] : memref<9x8x4xbf16, #tpu.memory_space<vmem>>, vector<1x8x4xbf16>
    %18 = vector.shape_cast %17 : vector<1x8x4xbf16> to vector<8x4xbf16>
    %c0_19 = arith.constant 0 : index
    %c0_20 = arith.constant 0 : index
    %c18 = arith.constant 18 : index
    %19 = vector.load %arg1[%c0_19, %c0_20, %c18] : memref<1x4x342xbf16, #tpu.memory_space<vmem>>, vector<1x4x288xbf16>
    %20 = vector.shape_cast %19 : vector<1x4x288xbf16> to vector<4x288xbf16>
    %cst_21 = arith.constant dense<0.000000e+00> : vector<8x288xf32>
    %21 = tpu.matmul %18, %20, %cst_21 {dimension_numbers = #tpu.dot_dimension_numbers<[1], [0], [0], [1], [0, 0, 1, 1], [], []>} : vector<8x4xbf16>, vector<4x288xbf16>, vector<8x288xf32> -> vector<8x288xf32>
    %22 = arith.addf %16, %21 : vector<8x288xf32>
    %c4 = arith.constant 4 : index
    %c0_22 = arith.constant 0 : index
    %c0_23 = arith.constant 0 : index
    %23 = vector.load %arg2[%c4, %c0_22, %c0_23] : memref<9x8x4xbf16, #tpu.memory_space<vmem>>, vector<1x8x4xbf16>
    %24 = vector.shape_cast %23 : vector<1x8x4xbf16> to vector<8x4xbf16>
    %c0_24 = arith.constant 0 : index
    %c0_25 = arith.constant 0 : index
    %c19 = arith.constant 19 : index
    %25 = vector.load %arg1[%c0_24, %c0_25, %c19] : memref<1x4x342xbf16, #tpu.memory_space<vmem>>, vector<1x4x288xbf16>
    %26 = vector.shape_cast %25 : vector<1x4x288xbf16> to vector<4x288xbf16>
    %cst_26 = arith.constant dense<0.000000e+00> : vector<8x288xf32>
    %27 = tpu.matmul %24, %26, %cst_26 {dimension_numbers = #tpu.dot_dimension_numbers<[1], [0], [0], [1], [0, 0, 1, 1], [], []>} : vector<8x4xbf16>, vector<4x288xbf16>, vector<8x288xf32> -> vector<8x288xf32>
    %28 = arith.addf %22, %27 : vector<8x288xf32>
    %c5 = arith.constant 5 : index
    %c0_27 = arith.constant 0 : index
    %c0_28 = arith.constant 0 : index
    %29 = vector.load %arg2[%c5, %c0_27, %c0_28] : memref<9x8x4xbf16, #tpu.memory_space<vmem>>, vector<1x8x4xbf16>
    %30 = vector.shape_cast %29 : vector<1x8x4xbf16> to vector<8x4xbf16>
    %c0_29 = arith.constant 0 : index
    %c0_30 = arith.constant 0 : index
    %c20 = arith.constant 20 : index
    %31 = vector.load %arg1[%c0_29, %c0_30, %c20] : memref<1x4x342xbf16, #tpu.memory_space<vmem>>, vector<1x4x288xbf16>
    %32 = vector.shape_cast %31 : vector<1x4x288xbf16> to vector<4x288xbf16>
    %cst_31 = arith.constant dense<0.000000e+00> : vector<8x288xf32>
    %33 = tpu.matmul %30, %32, %cst_31 {dimension_numbers = #tpu.dot_dimension_numbers<[1], [0], [0], [1], [0, 0, 1, 1], [], []>} : vector<8x4xbf16>, vector<4x288xbf16>, vector<8x288xf32> -> vector<8x288xf32>
    %34 = arith.addf %28, %33 : vector<8x288xf32>
    %c6 = arith.constant 6 : index
    %c0_32 = arith.constant 0 : index
    %c0_33 = arith.constant 0 : index
    %35 = vector.load %arg2[%c6, %c0_32, %c0_33] : memref<9x8x4xbf16, #tpu.memory_space<vmem>>, vector<1x8x4xbf16>
    %36 = vector.shape_cast %35 : vector<1x8x4xbf16> to vector<8x4xbf16>
    %c0_34 = arith.constant 0 : index
    %c0_35 = arith.constant 0 : index
    %c36 = arith.constant 36 : index
    %37 = vector.load %arg1[%c0_34, %c0_35, %c36] : memref<1x4x342xbf16, #tpu.memory_space<vmem>>, vector<1x4x288xbf16>
    %38 = vector.shape_cast %37 : vector<1x4x288xbf16> to vector<4x288xbf16>
    %cst_36 = arith.constant dense<0.000000e+00> : vector<8x288xf32>
    %39 = tpu.matmul %36, %38, %cst_36 {dimension_numbers = #tpu.dot_dimension_numbers<[1], [0], [0], [1], [0, 0, 1, 1], [], []>} : vector<8x4xbf16>, vector<4x288xbf16>, vector<8x288xf32> -> vector<8x288xf32>
    %40 = arith.addf %34, %39 : vector<8x288xf32>
    %c7 = arith.constant 7 : index
    %c0_37 = arith.constant 0 : index
    %c0_38 = arith.constant 0 : index
    %41 = vector.load %arg2[%c7, %c0_37, %c0_38] : memref<9x8x4xbf16, #tpu.memory_space<vmem>>, vector<1x8x4xbf16>
    %42 = vector.shape_cast %41 : vector<1x8x4xbf16> to vector<8x4xbf16>
    %c0_39 = arith.constant 0 : index
    %c0_40 = arith.constant 0 : index
    %c37 = arith.constant 37 : index
    %43 = vector.load %arg1[%c0_39, %c0_40, %c37] : memref<1x4x342xbf16, #tpu.memory_space<vmem>>, vector<1x4x288xbf16>
    %44 = vector.shape_cast %43 : vector<1x4x288xbf16> to vector<4x288xbf16>
    %cst_41 = arith.constant dense<0.000000e+00> : vector<8x288xf32>
    %45 = tpu.matmul %42, %44, %cst_41 {dimension_numbers = #tpu.dot_dimension_numbers<[1], [0], [0], [1], [0, 0, 1, 1], [], []>} : vector<8x4xbf16>, vector<4x288xbf16>, vector<8x288xf32> -> vector<8x288xf32>
    %46 = arith.addf %40, %45 : vector<8x288xf32>
    %c8 = arith.constant 8 : index
    %c0_42 = arith.constant 0 : index
    %c0_43 = arith.constant 0 : index
    %47 = vector.load %arg2[%c8, %c0_42, %c0_43] : memref<9x8x4xbf16, #tpu.memory_space<vmem>>, vector<1x8x4xbf16>
    %48 = vector.shape_cast %47 : vector<1x8x4xbf16> to vector<8x4xbf16>
    %c0_44 = arith.constant 0 : index
    %c0_45 = arith.constant 0 : index
    %c38 = arith.constant 38 : index
    %49 = vector.load %arg1[%c0_44, %c0_45, %c38] : memref<1x4x342xbf16, #tpu.memory_space<vmem>>, vector<1x4x288xbf16>
    %50 = vector.shape_cast %49 : vector<1x4x288xbf16> to vector<4x288xbf16>
    %cst_46 = arith.constant dense<0.000000e+00> : vector<8x288xf32>
    %51 = tpu.matmul %48, %50, %cst_46 {dimension_numbers = #tpu.dot_dimension_numbers<[1], [0], [0], [1], [0, 0, 1, 1], [], []>} : vector<8x4xbf16>, vector<4x288xbf16>, vector<8x288xf32> -> vector<8x288xf32>
    %52 = arith.addf %46, %51 : vector<8x288xf32>
    %c0_47 = arith.constant 0 : index
    %c0_48 = arith.constant 0 : index
    %53 = vector.load %arg3[%c0_47, %c0_48] : memref<1x288xf32, #tpu.memory_space<vmem>>, vector<1x288xf32>
    %54 = vector.broadcast %53 : vector<1x288xf32> to vector<8x288xf32>
    %55 = arith.mulf %52, %54 : vector<8x288xf32>
    %56 = arith.truncf %55 : vector<8x288xf32> to vector<8x288xbf16>
    %c0_49 = arith.constant 0 : index
    %c0_50 = arith.constant 0 : index
    %c0_51 = arith.constant 0 : index
    %57 = vector.load %arg4[%c0_49, %c0_50, %c0_51] : memref<1x8x288xbf16, #tpu.memory_space<vmem>>, vector<1x8x288xbf16>
    %58 = vector.shape_cast %57 : vector<1x8x288xbf16> to vector<8x288xbf16>
    %59 = vector.shape_cast %56 : vector<8x288xbf16> to vector<1x8x288xbf16>
    tpu.vector_store %arg4[%c0_49, %c0_50, %c0_51], %59 {strides = array<i32>} : memref<1x8x288xbf16, #tpu.memory_space<vmem>>, vector<1x8x288xbf16>,
    %cst_52 = arith.constant dense<0.000000e+00> : vector<8xf32>
    %60 = vector.multi_reduction <add>, %55, %cst_52 [1] : vector<8x288xf32> to vector<8xf32>
    %61 = vector.shape_cast %60 : vector<8xf32> to vector<8x1xf32>
    %c0_53 = arith.constant 0 : index
    %c0_54 = arith.constant 0 : index
    %c0_55 = arith.constant 0 : index
    %62 = vector.load %arg5[%c0_53, %c0_54, %c0_55] : memref<1x8x1xf32, #tpu.memory_space<vmem>>, vector<1x8x1xf32>
    %63 = vector.shape_cast %62 : vector<1x8x1xf32> to vector<8x1xf32>
    %64 = vector.shape_cast %61 : vector<8x1xf32> to vector<1x8x1xf32>
    tpu.vector_store %arg5[%c0_53, %c0_54, %c0_55], %64 {strides = array<i32>} : memref<1x8x1xf32, #tpu.memory_space<vmem>>, vector<1x8x1xf32>,
    %65 = arith.mulf %55, %55 : vector<8x288xf32>
    %cst_56 = arith.constant dense<0.000000e+00> : vector<8xf32>
    %66 = vector.multi_reduction <add>, %65, %cst_56 [1] : vector<8x288xf32> to vector<8xf32>
    %67 = vector.shape_cast %66 : vector<8xf32> to vector<8x1xf32>
    %c0_57 = arith.constant 0 : index
    %c0_58 = arith.constant 0 : index
    %c0_59 = arith.constant 0 : index
    %68 = vector.load %arg6[%c0_57, %c0_58, %c0_59] : memref<1x8x1xf32, #tpu.memory_space<vmem>>, vector<1x8x1xf32>
    %69 = vector.shape_cast %68 : vector<1x8x1xf32> to vector<8x1xf32>
    %70 = vector.shape_cast %67 : vector<8x1xf32> to vector<1x8x1xf32>
    tpu.vector_store %arg6[%c0_57, %c0_58, %c0_59], %70 {strides = array<i32>} : memref<1x8x1xf32, #tpu.memory_space<vmem>>, vector<1x8x1xf32>,
    return
  }
  func.func @transform_0(%arg0: i32) -> (i32, i32, i32) {
    %c0_i32 = arith.constant 0 : i32
    %c0_i32_0 = arith.constant 0 : i32
    %c0_i32_1 = arith.constant 0 : i32
    return %arg0, %c0_i32, %c0_i32_0 : i32, i32, i32
  }
  func.func @transform_1(%arg0: i32) -> (i32, i32, i32) {
    %c0_i32 = arith.constant 0 : i32
    %c0_i32_0 = arith.constant 0 : i32
    %c0_i32_1 = arith.constant 0 : i32
    %c0_i32_2 = arith.constant 0 : i32
    return %c0_i32, %c0_i32_0, %c0_i32_1 : i32, i32, i32
  }
  func.func @transform_2(%arg0: i32) -> (i32, i32) {
    %c0_i32 = arith.constant 0 : i32
    %c0_i32_0 = arith.constant 0 : i32
    %c0_i32_1 = arith.constant 0 : i32
    return %c0_i32, %c0_i32_0 : i32, i32
  }
  func.func @transform_3(%arg0: i32) -> (i32, i32, i32) {
    %c0_i32 = arith.constant 0 : i32
    %c0_i32_0 = arith.constant 0 : i32
    %c0_i32_1 = arith.constant 0 : i32
    return %arg0, %c0_i32, %c0_i32_0 : i32, i32, i32
  }
  func.func @transform_4(%arg0: i32) -> (i32, i32, i32) {
    %c0_i32 = arith.constant 0 : i32
    %c0_i32_0 = arith.constant 0 : i32
    %c0_i32_1 = arith.constant 0 : i32
    return %arg0, %c0_i32, %c0_i32_0 : i32, i32, i32
  }
  func.func @transform_5(%arg0: i32) -> (i32, i32, i32) {
    %c0_i32 = arith.constant 0 : i32
    %c0_i32_0 = arith.constant 0 : i32
    %c0_i32_1 = arith.constant 0 : i32
    return %arg0, %c0_i32, %c0_i32_0 : i32, i32, i32
  }
}

</mosaic_0001>

<bundles_post_ra>
// kernel: tpu_custom_call.1
= control target key start
LH: loop header
LB: loop body
LE: loop exit
PB: predicated region body
PF: predicated region fallthrough
CT: control target
= control target key end

     0   :  { %11 = vsyncpa [#allocation3], 0  ;;  %s2077_s0 = inlined_call_operand.vmem [shape: bf16[2,4,342], index: 0, kind: input, shape index: {}]   ;;  %s2078_s1 = inlined_call_operand.vmem [shape: bf16[9,8,4], index: 1, kind: input, shape index: {}]   ;;  %s2079_s2 = inlined_call_operand.vmem [shape: f32[1,288], index: 2, kind: input, shape index: {}]   ;;  %s2080_s3 = inlined_call_operand.hbm [shape: bf16[2,8,288], index: 3, kind: output, shape index: {0}]   ;;  %s2081_s4 = inlined_call_operand.vmem [shape: f32[2,8,1], index: 4, kind: output, shape index: {1}]   ;;  %s2082_s5 = inlined_call_operand.vmem [shape: f32[2,8,1], index: 5, kind: output, shape index: {2}]  }
   0x1   :  { %13 = vsyncpa [#allocation3 + $0x1], 0  ;;  %s1815_s18 = smov 0   ;;  %s1817_s19 = smov 0  }
   0x2   :  { %s1819_s20 = smov 0   ;;  %s1821_s21 = smov 0  }
   0x3 LB: > { %s1836_s22 = sadd.s32 4294967295, %s1770_s21   ;;  %s1527_s23 = sadd.s32 4294967294, %s1770_s21   ;;  %s1770_s21 = sphi %s1821_s21, %s2088_s21   ;;  %s1766_s20 = sphi %s1819_s20, %s2087_s20   ;;  %s1762_s19 = sphi %s1817_s19, %s2086_s19   ;;  %s1758_s18 = sphi %s1815_s18, %s2085_s18  }
   0x4   : > { %s1840_s24 = sadd.s32 1, %s1770_s21   ;;  %s94_s25 = sadd.s32 1, %s1766_s20 }
   0x5   : > { %s91_s26 = ssub.s32 %s1770_s21, %s1840_s24  ;;  %p104_p0 = scmp.ne.s32.totalorder %s1766_s20, %s1762_s19 }
   0x6   : > { %p92_p1 = scmp.eq.s32.totalorder %s91_s26, 0  ;;  %p105_p2 = scmp.eq.s32.totalorder %s1836_s22, 1 }
   0x7   : > { %p110_p3 = scmp.ne.s32.totalorder %s1762_s19, %s1758_s18  ;;  %p111_p4 = scmp.eq.s32.totalorder %s1527_s23, 1 }
   0x8   : > { %s1851_s27 = scalar_select %p92_p1, %s1766_s20, %s94_s25  }
   0x9   : > { %p1853_p5 = por %p105_p2, %p104_p0  ;;  %p1857_p6 = por %p111_p4, %p110_p3 }
   0xa   : > { %p1530_p7 = scmp.ge.s32.totalorder %s1770_s21, 1  ;;  %p195_p8 = scmp.lt.s32.totalorder %s1770_s21, 3 }
   0xc   : > { %p196_p9 = pnand %p1530_p7, %p195_p8 }
   0xd   : > { %p231_p10 = scmp.lt.s32.totalorder (!%p196_p9), %s1836_s22, 1  ;;  %s1776_s10 = smov (!%p196_p9), 127  }
   0xe   : > { %199 = sbr.rel (%p196_p9) target bundleno = 560 (0x230), region = 32  ;;  %s1777_s11 = smov (!%p196_p9), 126  }
   0xf   : > { %s1778_s12 = smov (!%p196_p9), 110   ;;  %s1779_s13 = smov (!%p196_p9), 109  }
  0x10   : > { %s1780_s14 = smov (!%p196_p9), 108   ;;  %s1781_s15 = smov (!%p196_p9), 92  }
  0x11   : > { %s1782_s16 = smov (!%p196_p9), 91   ;;  %s1783_s17 = smov (!%p196_p9), 90  }
  0x12   : > { %s216_s8 = sand.u32 (!%p196_p9), 1, %s1762_s19   ;;  %s1784_s23 = smov (!%p196_p9), [#allocation2]  }
  0x13   : > { %v254_v0 = vlaneseq  ;;  %v1772_v1 = vmov 1983009808   ;;  %v1773_v3 = vmov 0.0   ;;  %s1866_s30 = scalar_select %p231_p10, %s1836_s22, 1  ;;  %vm1774_vm0 = vmmov 0  }
  0x14   : > { %v252_v2 = vunpack.c.l.s4 %v1772_v1  ;;  %1594 = vmatprep.subr.bf16.mxu1 %v1773_v3  ;;  %1596 = vmatprep.mubr.msk.bf16.mxu1 %vm1774_vm0, %v1773_v3  ;;  %v1775_v6 = vmov 0   ;;  %vm279_vm1 = vcmask 1041408   ;;  %vm272_vm2 = vcmask 1039360   ;;  %v1534_v52 = vld [vmem:[%s2078_s1 + $0x4] sm:$0xf]  ;;  %s1714_s25 = sshll.u32 %s1784_s23, 4  ;;  %s1715_s25 = int_to_ptr.vmem [resolvable:$false] %s1714_s25 }
  0x15   : > { %v1868_v4 = vshrl.u32 %v254_v0, 7  ;;  %s1649_s6 = smul.u32 6, %s1866_s30  ;;  %321 = vmatprep.mubr.bf16.mxu0 %v1775_v6  ;;  %vm275_vm3 = vcmask 31744   ;;  %vm489_vm4 = vcmask 1031168   ;;  %v245_v62 = vld [vmem:[%s2078_s1] sm:$0xf] }
  0x16   : > { %v253_v5 = vunpack.c.0.s8 %v252_v2  ;;  %vm614_vm5 = vcmask 900096   ;;  %vm739_vm6 = vcmask 891904   ;;  %vm864_vm7 = vcmask 883712   ;;  %s1716_s26 = scalar_lea.vmem %s1715_s25, 384 }
  0x17   : > { %s1880_s9 = scalar_lea.vmem %s2077_s0, %s1649_s6  ;;  %vm989_vm8 = vcmask 752640   ;;  %vm1114_vm9 = vcmask 744448   ;;  %vm1239_vm10 = vcmask 736256   ;;  %vm1372_vm11 = vcmask 257024  }
  0x18   : > { %v1875_v7 = vsub.s32 %v253_v5, %v1868_v4  ;;  %v246_v8 = vld [vmem:[%s1880_s9] sm:$0x3f]  ;;  %vm1375_vm12 = vcmask 261120  }
  0x19   : > { %v250_v10 = vcombine.high %v246_v8, %v246_v8  ;;  %v465_v11 = vld [vmem:[%s1880_s9] sm:$0x3f] }
  0x1a   : > { %v1884_v9 = vrot.slane %v246_v8, %v1875_v7  ;;  %v474_v14 = vrot.slane %v465_v11, %v1875_v7  ;;  %v467_v15 = vcombine.high %v465_v11, %v465_v11  ;;  %v590_v17 = vld [vmem:[%s1880_s9] sm:$0x3f] }
  0x1b   : > { %v1889_v12 = vrot.slane %v250_v10, %v1875_v7  ;;  %v599_v19 = vrot.slane %v590_v17, %v1875_v7  ;;  %v592_v20 = vcombine.high %v590_v17, %v590_v17  ;;  %v715_v22 = vld [vmem:[%s1880_s9] sm:$0x3f]  ;;  %v1541_v10 = vld [vmem:[%s2078_s1 + $0x8] sm:$0xf] }
  0x1c   : > { %266 = vrot.lane.b32.xlu0 %v1884_v9, %s1776_s10  ;;  %v1893_v13 = vcombine.high %v1884_v9, %v1884_v9  ;;  %v482_v16 = vcombine.high %v474_v14, %v474_v14  ;;  %v481_v18 = vrot.slane %v467_v15, %v1875_v7  ;;  %v724_v24 = vrot.slane %v715_v22, %v1875_v7  ;;  %v840_v27 = vld [vmem:[%s1880_s9] sm:$0x3f] }
  0x1d   : > { %270 = vrot.lane.b32.xlu1 %v1889_v12, %s1776_s10  ;;  %v607_v21 = vcombine.high %v599_v19, %v599_v19  ;;  %v606_v23 = vrot.slane %v592_v20, %v1875_v7  ;;  %v717_v25 = vcombine.high %v715_v22, %v715_v22  ;;  %v849_v29 = vrot.slane %v840_v27, %v1875_v7  ;;  %v965_v32 = vld [vmem:[%s1880_s9] sm:$0x3f] }
  0x1e   : > { %v732_v26 = vcombine.high %v724_v24, %v724_v24  ;;  %v842_v30 = vcombine.high %v840_v27, %v840_v27  ;;  %v974_v34 = vrot.slane %v965_v32, %v1875_v7  ;;  %v967_v35 = vcombine.high %v965_v32, %v965_v32  ;;  %v1090_v37 = vld [vmem:[%s1880_s9] sm:$0x3f]  ;;  %v1549_v27 = vld [vmem:[%s2078_s1 + $0x10] sm:$0xf] }
  0x1f   : > { %v731_v28 = vrot.slane %v717_v25, %v1875_v7  ;;  %v857_v31 = vcombine.high %v849_v29, %v849_v29  ;;  %v1099_v39 = vrot.slane %v1090_v37, %v1875_v7  ;;  %v1092_v40 = vcombine.high %v1090_v37, %v1090_v37  ;;  %v1215_v42 = vld [vmem:[%s1880_s9] sm:$0x3f]  ;;  %s1648_s9 = smul.u32 12, %s216_s8 }
  0x20   : > { %268 = vrot.lane.b32.xlu0 %v1893_v13, %s1776_s10  ;;  %v856_v33 = vrot.slane %v842_v30, %v1875_v7  ;;  %v982_v36 = vcombine.high %v974_v34, %v974_v34  ;;  %v981_v38 = vrot.slane %v967_v35, %v1875_v7  ;;  %v1224_v44 = vrot.slane %v1215_v42, %v1875_v7  ;;  %v1553_v35 = vld [vmem:[%s2078_s1 + $0x14] sm:$0xf] }
  0x21   : > { %483 = vrot.lane.b32.xlu1 %v474_v14, %s1777_s11  ;;  %v1107_v41 = vcombine.high %v1099_v39, %v1099_v39  ;;  %v1106_v43 = vrot.slane %v1092_v40, %v1875_v7  ;;  %v1217_v45 = vcombine.high %v1215_v42, %v1215_v42  ;;  %v380_v55 = vsel %vm279_vm1, %v1889_v12, 0  ;;  %v1557_v42 = vld [vmem:[%s2078_s1 + $0x18] sm:$0xf]  ;;  %s218_s10 = scalar_lea.vmem [#allocation2], %s1648_s9 }
  0x22   : > { %v1232_v46 = vcombine.high %v1224_v44, %v1224_v44  ;;  %v374_v58 = vsel %vm279_vm1, %v1884_v9, 0 }
  0x23   : > { %v1231_v47 = vrot.slane %v1217_v45, %v1875_v7 }
  0x24   : > { %485 = vrot.lane.b32.xlu0 %v482_v16, %s1777_s11 }
  0x25   : > { %487 = vrot.lane.b32.xlu1 %v481_v18, %s1777_s11  ;;  %s1650_s11 = smul.u32 192, %s1836_s22 }
  0x28   : > { %608 = vrot.lane.b32.xlu0 %v599_v19, %s1778_s12  ;;  %v1545_v19 = vld [vmem:[%s2078_s1 + $0xc] sm:$0xf] }
  0x29   : > { %610 = vrot.lane.b32.xlu1 %v607_v21, %s1778_s12 }
  0x2c   : > { %612 = vrot.lane.b32.xlu0 %v606_v23, %s1778_s12  ;;  %s1414_s12 = sshll.u32 %s218_s10, 4  ;;  %s1415_s12 = int_to_ptr.vmem [resolvable:$true] %s1414_s12 }
  0x2d   : > { %733 = vrot.lane.b32.xlu1 %v724_v24, %s1779_s13  ;;  %p1717_p0 = scmp.lt.s32.totalorder %s1415_s12, %s1715_s25 }
  0x30   : > { %735 = vrot.lane.b32.xlu0 %v732_v26, %s1779_s13 }
  0x31   : > { %737 = vrot.lane.b32.xlu1 %v731_v28, %s1779_s13 }
  0x34   : > { %858 = vrot.lane.b32.xlu0 %v849_v29, %s1780_s14 }
  0x35   : > { %860 = vrot.lane.b32.xlu1 %v857_v31, %s1780_s14 }
  0x38   : > { %862 = vrot.lane.b32.xlu0 %v856_v33, %s1780_s14 }
  0x39   : > { %983 = vrot.lane.b32.xlu1 %v974_v34, %s1781_s15 }
  0x3c   : > { %985 = vrot.lane.b32.xlu0 %v982_v36, %s1781_s15 }
  0x3d   : > { %987 = vrot.lane.b32.xlu1 %v981_v38, %s1781_s15  ;;  %s1412_s15 = scalar_lea.hbm %s2080_s3, %s1650_s11 }
  0x40   : > { %1108 = vrot.lane.b32.xlu0 %v1099_v39, %s1782_s16 }
  0x41   : > { %1110 = vrot.lane.b32.xlu1 %v1107_v41, %s1782_s16 }
  0x44   : > { %1112 = vrot.lane.b32.xlu0 %v1106_v43, %s1782_s16  ;;  %s1392_s16 = scalar_lea.sflag [#allocation3], %s216_s8 }
  0x45   : > { %1233 = vrot.lane.b32.xlu1 %v1224_v44, %s1783_s17 }
  0x48   : > { %1235 = vrot.lane.b32.xlu0 %v1232_v46, %s1783_s17 }
  0x49   : > { %1237 = vrot.lane.b32.xlu1 %v1231_v47, %s1783_s17  ;;  %s1710_s17 = scalar_lea.vmem %s1415_s12, 192 }
  0x4a   : > { %p1711_p11 = scmp.ne.s32.totalorder %s1415_s12, %s1710_s17  ;;  %p1718_p1 = scmp.lt.s32.totalorder %s1716_s26, %s1710_s17 }
  0x4c   : > { %p1712_p12 = pnand %p1711_p11, %p1853_p5  ;;  %p1719_p2 = por %p1718_p1, %p1717_p0 }
  0x4e   : > { %p1713_p13 = pneg %p1712_p12 }
  0x50   : > { %p1720_p3 = pnand %p1719_p2, %p1713_p13 }
  0x8e   : > { %v267_v48 = vpop.permute.xlu0 %266 }
  0x8f   : > { %v271_v49 = vpop.permute.xlu1 %270 }
  0x90   : > { %v287_v50 = vsel %vm279_vm1, %v271_v49, 0 }
  0x91   : > { %1595 = vmatpush3.bf16.msra.mxu1 %v287_v50 }
  0x92   : > { %v269_v51 = vpop.permute.xlu0 %268  ;;  %1600 = vmatprep.subr.bf16.mxu1 %v1773_v3 }
  0x93   : > { %v274_v53 = vsel %vm272_vm2, %v269_v51, %v271_v49  ;;  %v273_v54 = vsel %vm272_vm2, %v267_v48, %v269_v51  ;;  %v484_v57 = vpop.permute.xlu1 %483  ;;  %v1561_v49 = vld [vmem:[%s2078_s1 + $0x1c] sm:$0xf] }
  0x94   : > { %1535 = vmatprep.subr.msk.bf16.mxu0 %vm279_vm1, %v274_v53  ;;  %v281_v56 = vsel %vm279_vm1, %v273_v54, 0  ;;  %1597 = vmatmul.mubr.msk.bf16.vlgmr.msra.gmra.mxu1 %vm275_vm3, %v1534_v52  ;;  %v1565_v53 = vld [vmem:[%s2078_s1 + $0x20] sm:$0xf] }
  0x95   : > { %304 = vmatpush1.bf16.msra.mxu0 %v281_v56  ;;  %1601 = vmatpush3.bf16.msra.mxu1 %v380_v55 }
  0x96   : > { %1538 = vmatprep.subr.msk.bf16.mxu0 %vm279_vm1, %v1893_v13  ;;  %v486_v59 = vpop.permute.xlu0 %485  ;;  %1602 = vmatprep.mubr.msk.bf16.mxu1 %vm1774_vm0, %v1773_v3 }
  0x97   : > { %1606 = vmatprep.subr.bf16.mxu1 %v1773_v3  ;;  %v488_v60 = vpop.permute.xlu1 %487  ;;  %v490_v0 = vsel %vm489_vm4, %v484_v57, %v486_v59 }
  0x98   : > { %1536 = vmatmul.mubr.msk.bf16.vlgmr.msra.gmra.mxu0 %vm275_vm3, %v1534_v52  ;;  %v491_v61 = vsel %vm489_vm4, %v486_v59, %v488_v60  ;;  %v502_v1 = vsel %vm279_vm1, %v488_v60, 0  ;;  %v496_v5 = vsel %vm279_vm1, %v490_v0, 0 }
  0x99   : > { %397 = vmatpush1.bf16.msra.mxu0 %v374_v58  ;;  %414 = vmatprep.mubr.bf16.mxu0 %v1775_v6 }
  0x9a   : > { %1542 = vmatprep.subr.msk.bf16.mxu0 %vm279_vm1, %v491_v61  ;;  %v609_v63 = vpop.permute.xlu0 %608 }
  0x9b   : > { %v611_v2 = vpop.permute.xlu1 %610 }
  0x9c   : > { %1603 = vmatmul.mubr.msk.bf16.vlgmr.msra.gmra.mxu1 %vm275_vm3, %v245_v62  ;;  %v615_v12 = vsel %vm614_vm5, %v609_v63, %v611_v2 }
  0x9d   : > { %1607 = vmatpush3.bf16.msra.mxu1 %v502_v1  ;;  %1608 = vmatprep.mubr.msk.bf16.mxu1 %vm1774_vm0, %v1773_v3  ;;  %v621_v15 = vsel %vm279_vm1, %v615_v12, 0 }
  0x9e   : > { %v613_v7 = vpop.permute.xlu0 %612  ;;  %1612 = vmatprep.subr.bf16.mxu1 %v1773_v3 }
  0x9f   : > { %v616_v8 = vsel %vm614_vm5, %v611_v2, %v613_v7  ;;  %v734_v9 = vpop.permute.xlu1 %733  ;;  %v627_v13 = vsel %vm279_vm1, %v613_v7, 0 }
  0xa0   : > { %1539 = vmatmul.mubr.msk.bf16.vlgmr.msra.gmra.mxu0 %vm275_vm3, %v245_v62 }
  0xa1   : > { %519 = vmatpush1.bf16.msra.mxu0 %v496_v5  ;;  %536 = vmatprep.mubr.bf16.mxu0 %v1775_v6 }
  0xa2   : > { %1546 = vmatprep.subr.msk.bf16.mxu0 %vm279_vm1, %v616_v8  ;;  %v736_v11 = vpop.permute.xlu0 %735 }
  0xa3   : > { %v738_v14 = vpop.permute.xlu1 %737  ;;  %v740_v20 = vsel %vm739_vm6, %v734_v9, %v736_v11 }
  0xa4   : > { %1609 = vmatmul.mubr.msk.bf16.vlgmr.msra.gmra.mxu1 %vm275_vm3, %v1541_v10  ;;  %v741_v17 = vsel %vm739_vm6, %v736_v11, %v738_v14  ;;  %v752_v21 = vsel %vm279_vm1, %v738_v14, 0  ;;  %v746_v23 = vsel %vm279_vm1, %v740_v20, 0 }
  0xa5   : > { %1613 = vmatpush3.bf16.msra.mxu1 %v627_v13  ;;  %1614 = vmatprep.mubr.msk.bf16.mxu1 %vm1774_vm0, %v1773_v3 }
  0xa6   : > { %v859_v16 = vpop.permute.xlu0 %858  ;;  %1618 = vmatprep.subr.bf16.mxu1 %v1773_v3 }
  0xa7   : > { %v861_v18 = vpop.permute.xlu1 %860 }
  0xa8   : > { %1543 = vmatmul.mubr.msk.bf16.vlgmr.msra.gmra.mxu0 %vm275_vm3, %v1541_v10  ;;  %v865_v28 = vsel %vm864_vm7, %v859_v16, %v861_v18 }
  0xa9   : > { %644 = vmatpush1.bf16.msra.mxu0 %v621_v15  ;;  %661 = vmatprep.mubr.bf16.mxu0 %v1775_v6  ;;  %v871_v31 = vsel %vm279_vm1, %v865_v28, 0 }
  0xaa   : > { %1550 = vmatprep.subr.msk.bf16.mxu0 %vm279_vm1, %v741_v17  ;;  %v863_v22 = vpop.permute.xlu0 %862 }
  0xab   : > { %v984_v24 = vpop.permute.xlu1 %983  ;;  %v866_v25 = vsel %vm864_vm7, %v861_v18, %v863_v22  ;;  %v877_v29 = vsel %vm279_vm1, %v863_v22, 0 }
  0xac   : > { %1615 = vmatmul.mubr.msk.bf16.vlgmr.msra.gmra.mxu1 %vm275_vm3, %v1545_v19 }
  0xad   : > { %1619 = vmatpush3.bf16.msra.mxu1 %v752_v21  ;;  %1620 = vmatprep.mubr.msk.bf16.mxu1 %vm1774_vm0, %v1773_v3 }
  0xae   : > { %1624 = vmatprep.subr.bf16.mxu1 %v1773_v3  ;;  %v986_v26 = vpop.permute.xlu0 %985 }
  0xaf   : > { %v988_v30 = vpop.permute.xlu1 %987  ;;  %v990_v36 = vsel %vm989_vm8, %v984_v24, %v986_v26 }
  0xb0   : > { %1547 = vmatmul.mubr.msk.bf16.vlgmr.msra.gmra.mxu0 %vm275_vm3, %v1545_v19  ;;  %v991_v33 = vsel %vm989_vm8, %v986_v26, %v988_v30  ;;  %v1002_v37 = vsel %vm279_vm1, %v988_v30, 0  ;;  %v996_v39 = vsel %vm279_vm1, %v990_v36, 0 }
  0xb1   : > { %769 = vmatpush1.bf16.msra.mxu0 %v746_v23  ;;  %786 = vmatprep.mubr.bf16.mxu0 %v1775_v6 }
  0xb2   : > { %1554 = vmatprep.subr.msk.bf16.mxu0 %vm279_vm1, %v866_v25  ;;  %v1109_v32 = vpop.permute.xlu0 %1108 }
  0xb3   : > { %v1111_v34 = vpop.permute.xlu1 %1110 }
  0xb4   : > { %1621 = vmatmul.mubr.msk.bf16.vlgmr.msra.gmra.mxu1 %vm275_vm3, %v1549_v27  ;;  %v1115_v43 = vsel %vm1114_vm9, %v1109_v32, %v1111_v34 }
  0xb5   : > { %1625 = vmatpush3.bf16.msra.mxu1 %v877_v29  ;;  %1626 = vmatprep.mubr.msk.bf16.mxu1 %vm1774_vm0, %v1773_v3  ;;  %v1121_v47 = vsel %vm279_vm1, %v1115_v43, 0 }
  0xb6   : > { %1630 = vmatprep.subr.bf16.mxu1 %v1773_v3  ;;  %v1113_v38 = vpop.permute.xlu0 %1112 }
  0xb7   : > { %v1234_v40 = vpop.permute.xlu1 %1233  ;;  %v1116_v41 = vsel %vm1114_vm9, %v1111_v34, %v1113_v38  ;;  %v1127_v44 = vsel %vm279_vm1, %v1113_v38, 0 }
  0xb8   : > { %1551 = vmatmul.mubr.msk.bf16.vlgmr.msra.gmra.mxu0 %vm275_vm3, %v1549_v27 }
  0xb9   : > { %894 = vmatpush1.bf16.msra.mxu0 %v871_v31  ;;  %911 = vmatprep.mubr.bf16.mxu0 %v1775_v6 }
  0xba   : > { %1558 = vmatprep.subr.msk.bf16.mxu0 %vm279_vm1, %v991_v33  ;;  %v1236_v45 = vpop.permute.xlu0 %1235 }
  0xbb   : > { %v1238_v46 = vpop.permute.xlu1 %1237  ;;  %v1240_v50 = vsel %vm1239_vm10, %v1234_v40, %v1236_v45 }
  0xbc   : > { %1627 = vmatmul.mubr.msk.bf16.vlgmr.msra.gmra.mxu1 %vm275_vm3, %v1553_v35  ;;  %v1241_v48 = vsel %vm1239_vm10, %v1236_v45, %v1238_v46  ;;  %v1252_v51 = vsel %vm279_vm1, %v1238_v46, 0  ;;  %v1246_v52 = vsel %vm279_vm1, %v1240_v50, 0 }
  0xbd   : > { %1631 = vmatpush3.bf16.msra.mxu1 %v1002_v37  ;;  %1632 = vmatprep.mubr.msk.bf16.mxu1 %vm1774_vm0, %v1773_v3 }
  0xbe   : > { %1636 = vmatprep.subr.bf16.mxu1 %v1773_v3 }
  0xc0   : > { %1555 = vmatmul.mubr.msk.bf16.vlgmr.msra.gmra.mxu0 %vm275_vm3, %v1553_v35 }
  0xc1   : > { %1019 = vmatpush1.bf16.msra.mxu0 %v996_v39  ;;  %1036 = vmatprep.mubr.bf16.mxu0 %v1775_v6 }
  0xc2   : > { %1562 = vmatprep.subr.msk.bf16.mxu0 %vm279_vm1, %v1116_v41 }
  0xc4   : > { %1633 = vmatmul.mubr.msk.bf16.vlgmr.msra.gmra.mxu1 %vm275_vm3, %v1557_v42 }
  0xc5   : > { %1637 = vmatpush3.bf16.msra.mxu1 %v1127_v44  ;;  %1638 = vmatprep.mubr.msk.bf16.mxu1 %vm1774_vm0, %v1773_v3 }
  0xc6   : > { %1642 = vmatprep.subr.bf16.mxu1 %v1773_v3 }
  0xc8   : > { %1559 = vmatmul.mubr.msk.bf16.vlgmr.msra.gmra.mxu0 %vm275_vm3, %v1557_v42 }
  0xc9   : > { %1144 = vmatpush1.bf16.msra.mxu0 %v1121_v47  ;;  %1161 = vmatprep.mubr.bf16.mxu0 %v1775_v6 }
  0xca   : > { %1566 = vmatprep.subr.msk.bf16.mxu0 %vm279_vm1, %v1241_v48 }
  0xcc   : > { %1639 = vmatmul.mubr.msk.bf16.vlgmr.msra.gmra.mxu1 %vm275_vm3, %v1561_v49 }
  0xcd   : > { %1643 = vmatpush3.bf16.msra.mxu1 %v1252_v51  ;;  %1644 = vmatprep.mubr.msk.bf16.mxu1 %vm1774_vm0, %v1773_v3 }
  0xd0   : > { %1563 = vmatmul.mubr.msk.bf16.vlgmr.msra.gmra.mxu0 %vm275_vm3, %v1561_v49 }
  0xd1   : > { %1269 = vmatpush1.bf16.msra.mxu0 %v1246_v52  ;;  %1286 = vmatprep.mubr.bf16.mxu0 %v1775_v6 }
  0xd4   : > { %1645 = vmatmul.mubr.msk.bf16.vlgmr.msra.gmra.mxu1 %vm275_vm3, %v1565_v53 }
  0xd8   : > { %1567 = vmatmul.mubr.msk.bf16.vlgmr.msra.gmra.mxu0 %vm275_vm3, %v1565_v53 }
 0x154   : > { %v364_v54 = vpop.f32.mrf.mxu1 }
 0x156   : > { %v1598_v55 = vpop.f32.mrf.mxu1 }
 0x158   : > { %v323_v56 = vpop.f32.mrf.mxu0  ;;  %v367_v57 = vpop.f32.mrf.mxu1 }
 0x15a   : > { %v325_v58 = vpop.f32.mrf.mxu0  ;;  %v1599_v59 = vpop.f32.mrf.mxu1 }
 0x15c   : > { %v327_v3 = vpop.f32.mrf.mxu0  ;;  %v457_v60 = vpop.f32.mrf.mxu1 }
 0x15d   : > { %v458_v41 = vadd.f32 %v457_v60, %v364_v54  ;;  %v1350_v54 = vsub.s32 2, %v1868_v4 }
 0x15e   : > { %v328_v61 = vpop.f32.mrf.mxu0  ;;  %v1604_v62 = vpop.f32.mrf.mxu1 }
 0x160   : > { %v416_v63 = vpop.f32.mrf.mxu0  ;;  %v460_v6 = vpop.f32.mrf.mxu1 }
 0x161   : > { %v417_v46 = vadd.f32 %v416_v63, %v323_v56  ;;  %v1338_v56 = vld [vmem:[%s2079_s2] sm:$0x7] }
 0x162   : > { %v418_v0 = vpop.f32.mrf.mxu0  ;;  %v1605_v1 = vpop.f32.mrf.mxu1 }
 0x163   : > { %v419_v50 = vadd.f32 %v418_v0, %v325_v58 }
 0x164   : > { %v420_v2 = vpop.f32.mrf.mxu0  ;;  %v579_v5 = vpop.f32.mrf.mxu1 }
 0x165   : > { %v587_v44 = vadd.f32 %v579_v5, %v458_v41 }
 0x166   : > { %v421_v7 = vpop.f32.mrf.mxu0  ;;  %v1610_v8 = vpop.f32.mrf.mxu1 }
 0x167   : > { %v1342_v7 = vsub.s32 0, %v1868_v4 }
 0x168   : > { %v538_v9 = vpop.f32.mrf.mxu0  ;;  %v582_v10 = vpop.f32.mrf.mxu1 }
 0x169   : > { %v585_v51 = vadd.f32 %v538_v9, %v417_v46  ;;  %v1351_v10 = vrot.slane %v1338_v56, %v1350_v54 }
 0x16a   : > { %v540_v11 = vpop.f32.mrf.mxu0  ;;  %v1611_v12 = vpop.f32.mrf.mxu1 }
 0x16b   : > { %v586_v57 = vadd.f32 %v540_v11, %v419_v50 }
 0x16c   : > { %v542_v13 = vpop.f32.mrf.mxu0  ;;  %v704_v14 = vpop.f32.mrf.mxu1 }
 0x16d   : > { %v712_v48 = vadd.f32 %v704_v14, %v587_v44  ;;  %v1346_v14 = vsub.s32 1, %v1868_v4 }
 0x16e   : > { %v543_v15 = vpop.f32.mrf.mxu0  ;;  %v1616_v16 = vpop.f32.mrf.mxu1 }
 0x170   : > { %v663_v17 = vpop.f32.mrf.mxu0  ;;  %v707_v18 = vpop.f32.mrf.mxu1 }
 0x171   : > { %v710_v59 = vadd.f32 %v663_v17, %v585_v51 }
 0x172   : > { %v665_v19 = vpop.f32.mrf.mxu0  ;;  %v1617_v20 = vpop.f32.mrf.mxu1 }
 0x173   : > { %v711_v60 = vadd.f32 %v665_v19, %v586_v57  ;;  %v1343_v19 = vrot.slane %v1338_v56, %v1342_v7 }
 0x174   : > { %v667_v21 = vpop.f32.mrf.mxu0  ;;  %v829_v22 = vpop.f32.mrf.mxu1 }
 0x175   : > { %v837_v53 = vadd.f32 %v829_v22, %v712_v48 }
 0x176   : > { %v668_v23 = vpop.f32.mrf.mxu0  ;;  %v1622_v24 = vpop.f32.mrf.mxu1 }
 0x178   : > { %v788_v25 = vpop.f32.mrf.mxu0  ;;  %v832_v26 = vpop.f32.mrf.mxu1 }
 0x179   : > { %v835_v6 = vadd.f32 %v788_v25, %v710_v59  ;;  %v1347_v25 = vrot.slane %v1338_v56, %v1346_v14 }
 0x17a   : > { %v790_v27 = vpop.f32.mrf.mxu0  ;;  %v1623_v28 = vpop.f32.mrf.mxu1 }
 0x17b   : > { %v836_v0 = vadd.f32 %v790_v27, %v711_v60 }
 0x17c   : > { %v792_v29 = vpop.f32.mrf.mxu0  ;;  %v954_v30 = vpop.f32.mrf.mxu1 }
 0x17d   : > { %v962_v61 = vadd.f32 %v954_v30, %v837_v53 }
 0x17e   : > { %v793_v31 = vpop.f32.mrf.mxu0  ;;  %v1628_v32 = vpop.f32.mrf.mxu1 }
 0x180   : > { %v913_v33 = vpop.f32.mrf.mxu0  ;;  %v957_v34 = vpop.f32.mrf.mxu1 }
 0x181   : > { %v960_v2 = vadd.f32 %v913_v33, %v835_v6 }
 0x182   : > { %v915_v35 = vpop.f32.mrf.mxu0  ;;  %v1629_v36 = vpop.f32.mrf.mxu1 }
 0x183   : > { %v961_v11 = vadd.f32 %v915_v35, %v836_v0 }
 0x184   : > { %v917_v37 = vpop.f32.mrf.mxu0  ;;  %v1079_v38 = vpop.f32.mrf.mxu1 }
 0x185   : > { %v1087_v58 = vadd.f32 %v1079_v38, %v962_v61 }
 0x186   : > { %v918_v39 = vpop.f32.mrf.mxu0  ;;  %v1634_v40 = vpop.f32.mrf.mxu1 }
 0x188   : > { %v1038_v42 = vpop.f32.mrf.mxu0  ;;  %v1082_v43 = vpop.f32.mrf.mxu1 }
 0x189   : > { %v1085_v12 = vadd.f32 %v1038_v42, %v960_v2 }
 0x18a   : > { %v1040_v45 = vpop.f32.mrf.mxu0  ;;  %v1635_v47 = vpop.f32.mrf.mxu1 }
 0x18b   : > { %v1086_v17 = vadd.f32 %v1040_v45, %v961_v11 }
 0x18c   : > { %v1042_v49 = vpop.f32.mrf.mxu0  ;;  %v1204_v52 = vpop.f32.mrf.mxu1 }
 0x18d   : > { %v1212_v8 = vadd.f32 %v1204_v52, %v1087_v58 }
 0x18e   : > { %v1043_v55 = vpop.f32.mrf.mxu0  ;;  %v1640_v3 = vpop.f32.mrf.mxu1 }
 0x190   : > { %v1163_v62 = vpop.f32.mrf.mxu0  ;;  %v1207_v1 = vpop.f32.mrf.mxu1 }
 0x191   : > { %v1210_v18 = vadd.f32 %v1163_v62, %v1085_v12 }
 0x192   : > { %v1165_v63 = vpop.f32.mrf.mxu0  ;;  %v1641_v5 = vpop.f32.mrf.mxu1 }
 0x193   : > { %v1211_v23 = vadd.f32 %v1165_v63, %v1086_v17 }
 0x194   : > { %v1167_v9 = vpop.f32.mrf.mxu0  ;;  %v1329_v13 = vpop.f32.mrf.mxu1 }
 0x195   : > { %v1337_v15 = vadd.f32 %v1329_v13, %v1212_v8 }
 0x196   : > { %v1168_v16 = vpop.f32.mrf.mxu0  ;;  %v1646_v20 = vpop.f32.mrf.mxu1 }
 0x197   : > { %v1357_v21 = vmul.f32 %v1351_v10, %v1337_v15 }
 0x198   : > { %v1288_v22 = vpop.f32.mrf.mxu0  ;;  %v1332_v26 = vpop.f32.mrf.mxu1 }
 0x199   : > { %v1335_v24 = vadd.f32 %v1288_v22, %v1210_v18  ;;  %v1575_v27 = vpack.c.bf16 %v1357_v21, %v1357_v21  ;;  %v1384_v34 = vmul.f32 %v1357_v21, %v1357_v21  ;;  %v1376_v39 = vsel %vm1375_vm12, %v1357_v21, 0.0 }
 0x19a   : > { %v1290_v28 = vpop.f32.mrf.mxu0  ;;  %v1647_v4 = vpop.f32.mrf.mxu1 }
 0x19b   : > { %v1355_v29 = vmul.f32 %v1343_v19, %v1335_v24  ;;  %v1336_v30 = vadd.f32 %v1290_v28, %v1211_v23  ;;  %1373 = vst.msk [vmem:[%s218_s10 + $0x8] sm:$0xf] %vm1372_vm11, %v1575_v27  ;;  %v1386_v42 = vsel %vm1375_vm12, %v1384_v34, 0.0 }
 0x19c   : > { %v1292_v31 = vpop.f32.mrf.mxu0 }
 0x19d   : > { %v1356_v32 = vmul.f32 %v1347_v25, %v1336_v30  ;;  %v1382_v37 = vmul.f32 %v1355_v29, %v1355_v29 }
 0x19e   : > { %v1293_v33 = vpop.f32.mrf.mxu0 }
 0x19f   : > { %v1574_v35 = vpack.c.bf16 %v1356_v32, %v1355_v29  ;;  %v1374_v36 = vadd.f32 %v1356_v32, %v1355_v29  ;;  %v1383_v38 = vmul.f32 %v1356_v32, %v1356_v32 }
 0x1a1   : > { %v1377_v40 = vadd.f32 %v1376_v39, %v1374_v36  ;;  %v1385_v41 = vadd.f32 %v1383_v38, %v1382_v37  ;;  %1371 = vst [vmem:[%s218_s10] sm:$0xff] %v1574_v35 }
 0x1a3   : > { %1378 = vadd.xlane.f32.xlu0 %v1377_v40  ;;  %v1387_v43 = vadd.f32 %v1386_v42, %v1385_v41 }
 0x1a5   : > { %1388 = vadd.xlane.f32.xlu1 %v1387_v43 }
 0x1a6   : > { %1723 = shalt.err (!%p1720_p3)
}
 0x1a7   : > { %s1724_s22 = scalar_lea.hbm %s1412_s15, 192  ;;  %s1728_s8 = scalar_lea.hbm %s2080_s3, 384 }
 0x1a8   : > { %p1725_p4 = scmp.ne.s32.totalorder %s1412_s15, %s1724_s22  ;;  %p1729_p9 = scmp.lt.s32.totalorder %s1412_s15, %s2080_s3 }
 0x1a9   : > { %p1730_p10 = scmp.lt.s32.totalorder %s1728_s8, %s1724_s22 }
 0x1aa   : > { %p1726_p7 = pnand %p1725_p4, %p1853_p5 }
 0x1ab   : > { %p1731_p11 = por %p1730_p10, %p1729_p9 }
 0x1ac   : > { %p1727_p8 = pneg %p1726_p7 }
 0x1ae   : > { %p1732_p12 = pnand %p1731_p11, %p1727_p8 }
 0x1b0   : > { %1735 = shalt.err (!%p1732_p12)
}
 0x1b1   : > { %1651 = dma.vmem_to_hbm [thread:$0]  (%p1853_p5), %s1415_s12, 192, %s1412_s15, %s1392_s16   ;;  %vm1380_vm13 = vcmask 7168  }
 0x1b2   : > { %s1532_s11 = sshll.u32 %s1866_s30, 3 }
 0x1b3   : > { %s239_s17 = scalar_lea.vmem %s2081_s4, %s1532_s11  ;;  %s243_s26 = scalar_lea.vmem %s2082_s5, %s1532_s11 }
 0x22c   : > { %v1379_v44 = vpop.xlane.xlu0 %1378 }
 0x22d   : > { %1381 = vst.msk [vmem:[%s239_s17] sm:$0xff] %vm1380_vm13, %v1379_v44 }
 0x22e   : > { %v1389_v45 = vpop.xlane.xlu1 %1388 }
 0x22f   : > { %1390 = vst.msk [vmem:[%s243_s26] sm:$0xff] %vm1380_vm13, %v1389_v45 }
 0x230 PF: > { %p1657_p13 = scmp.ge.s32.totalorder %s1770_s21, 2  ;;  %s1432_s28 = sand.u32 1, %s1758_s18  }
 0x231   : > { %s1433_s30 = scalar_lea.sflag [#allocation3], %s1432_s28 }
 0x232   : > { %p1654_p5 = pnand %p1657_p13, %p1857_p6 }
 0x234   : > { %p1655_p0 = pneg %p1654_p5 }
 0x236   : > { %1753 = dma.done.wait (%p1655_p0), %s1433_s30, 192  }
 0x237   : > { %1755 = vsyncadd (%p1655_p0), %s1433_s30, 4294967104  ;;  %p16_p1 = scmp.ge.s32.totalorder %s1840_s24, 4   ;;  %s2085_s18 = smov %s1762_s19 }
 0x238   : > { %s2086_s19 = smov %s1766_s20  ;;  %s2087_s20 = smov %s1851_s27 }
 0x239   : > { %s2088_s21 = smov %s1840_s24  ;;  %18 = sbr.rel (!%p16_p1) target bundleno = 3 (0x3), region = 99 }
 0x23e   :  { %1452 = vsyncpa [#allocation3], 1 }
 0x23f   :  { %1454 = vsyncpa [#allocation3 + $0x1], 1 }

</bundles_post_ra>
